<compile_context>
chip_gen: v5e
topology: v5e:2x2
jax: 0.10.0
libtpu: 0.0.40
codegen_flags: <defaults>
</compile_context>

<pallas_src>
import functools

import jax
import jax.numpy as jnp
from jax.experimental import pallas as pl
from jax.experimental.pallas import tpu as pltpu

LANE = 128
SUBLANE = 8
TARGET_TILE_BYTES = 2 << 20       # ~2 MiB per input tile: amortizes ~0.35 us/step
MIN_SPLIT_TILE_BYTES = 512 << 10  # keep >=512 KiB tiles when splitting for multi-TC


def _reduce_rows_to_tile(d, block_rows):
    """(block_rows, 128) f32 -> (8, 128) partial sum, two-stage for ILP."""
    g = block_rows // SUBLANE
    d3 = d.reshape(g, SUBLANE, LANE)
    if g <= 1:
        return d3.reshape(SUBLANE, LANE)
    p = 1
    for cand in (8, 4, 2):
        if g % cand == 0:
            p = cand
            break
    if p > 1 and g > p:
        # p independent accumulation chains of length g/p, then a short final add.
        d4 = d3.reshape(p, g // p, SUBLANE, LANE)
        return d4.sum(axis=1).sum(axis=0)
    return d3.sum(axis=0)


def _l1_partial_kernel(s_ref, t_ref, o_ref, *, block_rows, valid_rows, need_mask):
    """Per-grid-block partial sum of |s - t|, reduced to an (8, 128) f32 tile."""
    d = jnp.abs(s_ref[...].astype(jnp.float32) - t_ref[...].astype(jnp.float32))
    if need_mask:
        i = pl.program_id(0)
        last = pl.num_programs(0) - 1

        # Only the final (overhanging) block pays for the iota/compare/select.
        @pl.when(i == last)
        def _():
            row = (i * block_rows
                   + jax.lax.broadcasted_iota(jnp.int32, (block_rows, LANE), 0))
            dm = jnp.where(row < valid_rows, d, 0.0)
            o_ref[...] = _reduce_rows_to_tile(dm, block_rows).reshape(1, SUBLANE, LANE)

        @pl.when(i != last)
        def _():
            o_ref[...] = _reduce_rows_to_tile(d, block_rows).reshape(1, SUBLANE, LANE)
    else:
        o_ref[...] = _reduce_rows_to_tile(d, block_rows).reshape(1, SUBLANE, LANE)


def _l1_elemwise_kernel(s_ref, t_ref, o_ref, *, weight):
    """reduction='none' path: elementwise weighted |s - t| in the input dtype."""
    d = jnp.abs(s_ref[...] - t_ref[...])
    if weight != 1.0:
        d = d * jnp.asarray(weight, dtype=d.dtype)
    o_ref[...] = d.astype(o_ref.dtype)


def _pick_block_rows(rows, itemsize):
    """Block height from a byte budget, dtype-aware sublane rounding, and a cap
    that keeps >=~4 grid blocks (v7x dual-TC sharding) when tiles stay big."""
    sub = max(SUBLANE, 32 // itemsize)          # f32 -> 8, bf16 -> 16, int8 -> 32
    row_bytes = LANE * itemsize
    rows_up = pl.cdiv(rows, sub) * sub
    target = max(sub, (TARGET_TILE_BYTES // row_bytes) // sub * sub)
    br = min(target, rows_up)
    quarter = (rows_up // 4) // sub * sub
    if quarter * row_bytes >= MIN_SPLIT_TILE_BYTES:
        br = min(br, quarter)
    return max(br, sub)


def _lane_prefix_slabs(s_flat, t_flat, n, n_lane, rows):
    """Return (rows, 128) views of the lane-aligned prefix of both flat inputs.
    Copy-free when n is already a multiple of 128."""
    if n_lane == n:
        return s_flat.reshape(rows, LANE), t_flat.reshape(rows, LANE)
    s2 = jax.lax.slice(s_flat, (0,), (n_lane,)).reshape(rows, LANE)
    t2 = jax.lax.slice(t_flat, (0,), (n_lane,)).reshape(rows, LANE)
    return s2, t2


def l1_loss_pallas(s_feature, t_feature, *, loss_weight=1.0, reduction="mean"):
    assert s_feature.shape == t_feature.shape
    assert reduction in {"none", "batchmean", "sum", "mean"}
    # F.l1_loss only supports none/mean/sum; 'batchmean' is accepted by __init__
    # but errors in the torch forward, so we mirror that here.
    if reduction == "batchmean":
        raise ValueError("F.l1_loss does not support reduction='batchmean'")

    shape = s_feature.shape
    dtype = s_feature.dtype
    n = int(s_feature.size)

    if n == 0:
        if reduction == "none":
            return jnp.zeros(shape, dtype)
        val = jnp.float32(float("nan")) if reduction == "mean" else jnp.float32(0.0)
        return (val * jnp.float32(loss_weight)).astype(dtype)

    itemsize = jnp.dtype(dtype).itemsize
    s_flat = s_feature.reshape(-1)
    t_flat = t_feature.reshape(-1)
    n_lane = (n // LANE) * LANE
    rows = n_lane // LANE

    if reduction in ("mean", "sum"):
        total = jnp.zeros((), jnp.float32)
        if rows > 0:
            s2, t2 = _lane_prefix_slabs(s_flat, t_flat, n, n_lane, rows)
            br = _pick_block_rows(rows, itemsize)
            num_blocks = pl.cdiv(rows, br)
            need_mask = (num_blocks * br) != rows
            kernel = functools.partial(_l1_partial_kernel, block_rows=br,
                                       valid_rows=rows, need_mask=need_mask)
            partials = pl.pallas_call(
                kernel,
                out_shape=jax.ShapeDtypeStruct((num_blocks, SUBLANE, LANE), jnp.float32),
                grid_spec=pl.GridSpec(
                    grid=(num_blocks,),
                    in_specs=[pl.BlockSpec((br, LANE), lambda i: (i, 0)),
                              pl.BlockSpec((br, LANE), lambda i: (i, 0))],
                    out_specs=pl.BlockSpec((1, SUBLANE, LANE), lambda i: (i, 0, 0)),
                ),
                compiler_params=pltpu.CompilerParams(
                    dimension_semantics=("parallel",)),
            )(s2, t2)
            total = jnp.sum(partials)
        if n_lane != n:
            # <=127-element tail, handled in plain JAX (no whole-array pad).
            s_tail = jax.lax.slice(s_flat, (n_lane,), (n,))
            t_tail = jax.lax.slice(t_flat, (n_lane,), (n,))
            total = total + jnp.sum(
                jnp.abs(s_tail.astype(jnp.float32) - t_tail.astype(jnp.float32)))
        scale = (loss_weight / n) if reduction == "mean" else loss_weight
        return (total * jnp.float32(scale)).astype(dtype)

    # reduction == 'none'
    weight = float(loss_weight)
    if rows > 0:
        s2, t2 = _lane_prefix_slabs(s_flat, t_flat, n, n_lane, rows)
        br = _pick_block_rows(rows, itemsize)
        num_blocks = pl.cdiv(rows, br)
        main = pl.pallas_call(
            functools.partial(_l1_elemwise_kernel, weight=weight),
            out_shape=jax.ShapeDtypeStruct((rows, LANE), dtype),
            grid_spec=pl.GridSpec(
                grid=(num_blocks,),
                in_specs=[pl.BlockSpec((br, LANE), lambda i: (i, 0)),
                          pl.BlockSpec((br, LANE), lambda i: (i, 0))],
                out_specs=pl.BlockSpec((br, LANE), lambda i: (i, 0)),
            ),
            compiler_params=pltpu.CompilerParams(
                dimension_semantics=("parallel",)),
        )(s2, t2)
        if n_lane == n:
            return main.reshape(shape)     # free reshape, zero extra copies
        main_flat = main.reshape(-1)
    else:
        main_flat = jnp.zeros((0,), dtype)

    # Ragged tail (<128 elems) in plain JAX, then reassemble.
    s_tail = jax.lax.slice(s_flat, (n_lane,), (n,))
    t_tail = jax.lax.slice(t_flat, (n_lane,), (n,))
    tail = jnp.abs(s_tail - t_tail)
    if weight != 1.0:
        tail = tail * jnp.asarray(weight, dtype=tail.dtype)
    tail = tail.astype(dtype)
    return jnp.concatenate([main_flat, tail]).reshape(shape)


class L1Loss:
    """JAX/Pallas port of the torch L1Loss distillation module (no parameters)."""

    def __init__(self, loss_weight: float = 1.0, size_average=None, reduce=None,
                 reduction: str = "mean"):
        assert reduction in {"none", "batchmean", "sum", "mean"}
        # size_average / reduce are deprecated torch args; if given they override
        # reduction following torch's legacy rules.
        if size_average is not None or reduce is not None:
            sa = True if size_average is None else size_average
            rd = True if reduce is None else reduce
            reduction = ("mean" if sa else "sum") if rd else "none"
        self.loss_weight = loss_weight
        self.reduction = reduction

    def __call__(self, s_feature, t_feature):
        return l1_loss_pallas(s_feature, t_feature,
                              loss_weight=self.loss_weight,
                              reduction=self.reduction)


if __name__ == "__main__":
    key = jax.random.PRNGKey(0)
    k1, k2, k3, k4, k5, k6, k7, k8 = jax.random.split(key, 8)

    # student / teacher features, NCHW: (N=2, C=4, H=16, W=16)  -> lane-aligned fast path
    s = jax.random.normal(k1, (2, 4, 16, 16), dtype=jnp.float32)
    t = jax.random.normal(k2, (2, 4, 16, 16), dtype=jnp.float32)

    loss_mean = L1Loss(loss_weight=1.0, reduction="mean")(s, t)
    jax.block_until_ready(loss_mean)
    assert jnp.allclose(loss_mean, jnp.mean(jnp.abs(s - t)), rtol=1e-5, atol=1e-6)

    loss_sum = L1Loss(loss_weight=0.5, reduction="sum")(s, t)
    assert jnp.allclose(loss_sum, 0.5 * jnp.sum(jnp.abs(s - t)), rtol=1e-5, atol=1e-4)

    loss_none = L1Loss(loss_weight=2.0, reduction="none")(s, t)
    assert loss_none.shape == s.shape
    assert jnp.allclose(loss_none, 2.0 * jnp.abs(s - t), rtol=1e-5, atol=1e-6)

    # lane-aligned but rows not a multiple of 8 -> exercises the last-block mask path
    s_m = jax.random.normal(k3, (2, 4, 12, 16), dtype=jnp.float32)
    t_m = jax.random.normal(k4, (2, 4, 12, 16), dtype=jnp.float32)
    loss_m = L1Loss(reduction="mean")(s_m, t_m)
    assert jnp.allclose(loss_m, jnp.mean(jnp.abs(s_m - t_m)), rtol=1e-5, atol=1e-6)

    # non-lane-aligned numel smaller than one lane row -> pure JAX tail path
    s_odd = jax.random.normal(k5, (3, 5, 7), dtype=jnp.float32)
    t_odd = jax.random.normal(k6, (3, 5, 7), dtype=jnp.float32)
    loss_odd = L1Loss(reduction="mean")(s_odd, t_odd)
    assert jnp.allclose(loss_odd, jnp.mean(jnp.abs(s_odd - t_odd)), rtol=1e-5, atol=1e-6)
    none_odd = L1Loss(reduction="none")(s_odd, t_odd)
    assert none_odd.shape == s_odd.shape
    assert jnp.allclose(none_odd, jnp.abs(s_odd - t_odd), rtol=1e-5, atol=1e-6)

    # non-lane-aligned numel with a lane-aligned prefix -> kernel + JAX tail + mask
    s_p = jax.random.normal(k7, (3, 5, 100), dtype=jnp.float32)
    t_p = jax.random.normal(k8, (3, 5, 100), dtype=jnp.float32)
    loss_p = L1Loss(reduction="sum")(s_p, t_p)
    assert jnp.allclose(loss_p, jnp.sum(jnp.abs(s_p - t_p)), rtol=1e-5, atol=1e-4)
    none_p = L1Loss(loss_weight=1.5, reduction="none")(s_p, t_p)
    assert none_p.shape == s_p.shape
    assert jnp.allclose(none_p, 1.5 * jnp.abs(s_p - t_p), rtol=1e-5, atol=1e-6)

    # bf16 inputs -> exercises the 16-row packed-sublane block rounding
    s_bf = s.astype(jnp.bfloat16)
    t_bf = t.astype(jnp.bfloat16)
    loss_bf = L1Loss(reduction="mean")(s_bf, t_bf)
    ref_bf = jnp.mean(jnp.abs(s_bf.astype(jnp.float32) - t_bf.astype(jnp.float32)))
    assert jnp.allclose(loss_bf.astype(jnp.float32), ref_bf, rtol=2e-2, atol=2e-2)

    jax.block_until_ready((loss_mean, loss_sum, loss_none, loss_m, loss_odd,
                           none_odd, loss_p, none_p, loss_bf))
    print("KERNEL_OK")
</pallas_src>

<mosaic_0001>
module attributes {stable_mosaic.version = 11 : i64} {
  func.func @_l1_partial_kernel(%arg0: i32, %arg1: memref<16x128xf32, #tpu.memory_space<vmem>>, %arg2: memref<16x128xf32, #tpu.memory_space<vmem>>, %arg3: memref<1x8x128xf32, #tpu.memory_space<vmem>>) attributes {dimension_semantics = [#tpu.dimension_semantics<parallel>], iteration_bounds = array<i64: 1>, scalar_prefetch = 0 : i64, scratch_operands = 0 : i64, tpu.core_type = #tpu.core_type<tc>, window_params = [{transform_indices = @transform_0, window_bounds = array<i64: 16, 128>}, {transform_indices = @transform_1, window_bounds = array<i64: 16, 128>}, {transform_indices = @transform_2, window_bounds = array<i64: 1, 8, 128>}]} {
    %c0 = arith.constant 0 : index
    %c0_0 = arith.constant 0 : index
    %0 = vector.load %arg1[%c0, %c0_0] : memref<16x128xf32, #tpu.memory_space<vmem>>, vector<16x128xf32>
    %c0_1 = arith.constant 0 : index
    %c0_2 = arith.constant 0 : index
    %1 = vector.load %arg2[%c0_1, %c0_2] : memref<16x128xf32, #tpu.memory_space<vmem>>, vector<16x128xf32>
    %2 = arith.subf %0, %1 : vector<16x128xf32>
    %3 = math.absf %2 : vector<16x128xf32>
    %4 = vector.shape_cast %3 : vector<16x128xf32> to vector<2x8x128xf32>
    %cst = arith.constant dense<0.000000e+00> : vector<8x128xf32>
    %5 = vector.multi_reduction <add>, %4, %cst [0] : vector<2x8x128xf32> to vector<8x128xf32>
    %6 = vector.shape_cast %5 : vector<8x128xf32> to vector<1x8x128xf32>
    %c0_3 = arith.constant 0 : index
    %c0_4 = arith.constant 0 : index
    %c0_5 = arith.constant 0 : index
    %7 = vector.load %arg3[%c0_3, %c0_4, %c0_5] : memref<1x8x128xf32, #tpu.memory_space<vmem>>, vector<1x8x128xf32>
    tpu.vector_store %arg3[%c0_3, %c0_4, %c0_5], %6 {strides = array<i32>} : memref<1x8x128xf32, #tpu.memory_space<vmem>>, vector<1x8x128xf32>,
    return
  }
  func.func @transform_0(%arg0: i32) -> (i32, i32) {
    %c0_i32 = arith.constant 0 : i32
    %c0_i32_0 = arith.constant 0 : i32
    return %arg0, %c0_i32 : i32, i32
  }
  func.func @transform_1(%arg0: i32) -> (i32, i32) {
    %c0_i32 = arith.constant 0 : i32
    %c0_i32_0 = arith.constant 0 : i32
    return %arg0, %c0_i32 : i32, i32
  }
  func.func @transform_2(%arg0: i32) -> (i32, i32, i32) {
    %c0_i32 = arith.constant 0 : i32
    %c0_i32_0 = arith.constant 0 : i32
    %c0_i32_1 = arith.constant 0 : i32
    return %arg0, %c0_i32, %c0_i32_0 : i32, i32, i32
  }
}

</mosaic_0001>

<bundles_post_ra>
// kernel: tpu_custom_call.1
= control target key start
LH: loop header
LB: loop body
LE: loop exit
PB: predicated region body
PF: predicated region fallthrough
CT: control target
= control target key end

     0   :  { %7 = vsyncpa [#allocation3], 0  ;;  %s184_s0 = inlined_call_operand.hbm [shape: f32[16,128], index: 0, kind: input, shape index: {}]   ;;  %s185_s1 = inlined_call_operand.hbm [shape: f32[16,128], index: 1, kind: input, shape index: {}]   ;;  %s186_s2 = inlined_call_operand.hbm [shape: f32[1,8,128], index: 2, kind: output, shape index: {}]  }
   0x1   :  { %8 = vsyncpa [#allocation6], 0 }
   0x2   :  { %9 = vsyncpa [#allocation4], 0  ;;  %s14_s11 = sshll.u32 %s184_s0, 4  ;;  %s155_s12 = smov [#allocation2]   ;;  %s15_s11 = int_to_ptr.hbm [resolvable:$true] %s14_s11 }
   0x3   :  { %s16_s13 = sshll.u32 %s155_s12, 4  ;;  %s27_s16 = sshll.u32 %s185_s1, 4  ;;  %s17_s13 = int_to_ptr.vmem [resolvable:$true] %s16_s13  ;;  %s28_s16 = int_to_ptr.hbm [resolvable:$true] %s27_s16 }
   0x4   :  { %s156_s17 = smov 128   ;;  %s157_s18 = smov 8  }
   0x5   :  { %22 = dma.hbm_to_vmem [thread:$0]  %s15_s11, 256, %s17_s13, [#allocation3], %s156_s17, %s156_s17, %s157_s18  }
   0x6   :  { %s158_s19 = smov [#allocation5]  }
   0x7   :  { %s29_s20 = sshll.u32 %s158_s19, 4  ;;  %s30_s20 = int_to_ptr.vmem [resolvable:$true] %s29_s20 }
   0x8   :  { %35 = dma.hbm_to_vmem [thread:$0]  %s28_s16, 256, %s30_s20, [#allocation6], %s156_s17, %s156_s17, %s157_s18  }
   0x9   :  { %149 = dma.done.wait [#allocation3], 256  }
   0xa   :  { %150 = vsyncadd [#allocation3], 4294967040 }
   0xb   :  { %151 = dma.done.wait [#allocation6], 256  }
   0xc   :  { %152 = vsyncadd [#allocation6], 4294967040  ;;  %v44_v0 = vld [vmem:[#allocation2] sm:$0xff]  ;;  %v45_v1 = vld [vmem:[#allocation2 + $0x8] sm:$0xff]  ;;  %s159_s0 = smov [#allocation7]   ;;  %s61_s23 = sshll.u32 %s186_s2, 4  ;;  %s62_s23 = int_to_ptr.hbm [resolvable:$true] %s61_s23 }
   0xd   :  { %v46_v2 = vld [vmem:[#allocation5] sm:$0xff]  ;;  %v47_v3 = vld [vmem:[#allocation5 + $0x8] sm:$0xff]  ;;  %s59_s1 = sshll.u32 %s159_s0, 4  ;;  %s60_s1 = int_to_ptr.vmem [resolvable:$true] %s59_s1 }
   0xe   :  { %v48_v4 = vsub.f32 %v44_v0, %v46_v2  ;;  %v49_v5 = vsub.f32 %v45_v1, %v47_v3 }
  0x10   :  { %v50_v6 = vand.u32 2147483647, %v48_v4  ;;  %v51_v7 = vand.u32 2147483647, %v49_v5 }
  0x12   :  { %v52_v8 = vadd.f32 %v51_v7, %v50_v6 }
  0x14   :  { %53 = vst [vmem:[#allocation7] sm:$0xff] %v52_v8 }
  0x15   :  { %64 = dma.vmem_to_hbm [thread:$0]  %s60_s1, 128, %s62_s23, [#allocation4]  }
  0x16   :  { %153 = dma.done.wait [#allocation4], 128  }
  0x17   :  { %154 = vsyncadd [#allocation4], 4294967168 }
  0x18   :  { %69 = vsyncpa [#allocation3], 1 }
  0x19   :  { %70 = vsyncpa [#allocation6], 1 }
  0x1a   :  { %71 = vsyncpa [#allocation4], 1 }

</bundles_post_ra>
